<compile_context>
chip_gen: v5e
topology: v5e:2x2
jax: 0.10.0
libtpu: 0.0.40
codegen_flags: <defaults>
</compile_context>

<pallas_src>
import jax
import jax.numpy as jnp
from jax import lax
from jax.experimental import pallas as pl
from jax.experimental.pallas import tpu as pltpu


BETA = 1.2  # set_beta()


def _core_loss_kernel(scalars_ref, x_ref, tgt_ref, prior_ref, score_ref, part_ref):
    step = scalars_ref[0]      # int32 scalar
    n_valid = scalars_ref[1]   # true (unpadded) batch size

    x = x_ref[...].astype(jnp.float32)            # (T, C)  upcast per tile
    tgt = tgt_ref[...]                            # (T, 1)  int32
    prior = prior_ref[...].astype(jnp.float32)    # (1, C)
    t, c = x.shape

    col = lax.broadcasted_iota(jnp.int32, (t, c), 1)
    onehot = col == tgt                           # (T, C) bool

    # --- stable logsumexp; exp(z) reused for both softmax terms -------------
    m = jnp.max(x, axis=1, keepdims=True)                       # (T, 1)
    e_z = jnp.exp(x - m)                                        # (T, C)  EUP #1
    se = jnp.sum(e_z, axis=1, keepdims=True)                    # (T, 1)
    log_se = jnp.log(se)                                        # (T, 1)  cheap
    lse = m + log_se                                            # (T, 1)

    # --- per-sample cross entropy: ce_i = lse_i - x[i, target_i] ------------
    x_tgt = jnp.sum(jnp.where(onehot, x, 0.0), axis=1, keepdims=True)
    ce = lse - x_tgt                                            # (T, 1)

    # --- loss_ = -log(softmax(x) + 1e-8) = log(se) - log(e_z + 1e-8*se) -----
    loss_full = log_se - jnp.log(e_z + jnp.float32(1e-8) * se)  # (T, C)  EUP #2

    # --- score = ce - mean(loss_, axis=1)  (the @no_grad data selector) -----
    score = ce - jnp.sum(loss_full, axis=1, keepdims=True) * jnp.float32(1.0 / c)

    # --- adjusted loss = ce - beta * sum(prior * loss_, axis=1) -------------
    loss_cr = jnp.float32(BETA) * jnp.sum(prior * loss_full, axis=1, keepdims=True)
    adj = ce - loss_cr                                          # (T, 1)

    # --- selection mask v: 1 if step <= 500 else (score < 0); padded rows 0 --
    row = pl.program_id(0) * t + lax.broadcasted_iota(jnp.int32, (t, 1), 0)
    valid = row < n_valid
    v = (((step <= 500) | (score < 0.0)) & valid).astype(jnp.float32)

    sum_v = jnp.sum(v)
    vsum = jnp.sum(v * adj)

    # outputs: per-sample score tile + lane-dense per-tile partial sums
    score_ref[...] = score
    lane = lax.broadcasted_iota(jnp.int32, (1, 128), 1)
    part_ref[...] = jnp.where(lane == 0, sum_v,
                              jnp.where(lane == 1, vsum, jnp.float32(0.0)))


def _choose_tile_n(n, c, in_itemsize):
    # Keep the input tile around <= 2 MiB so the ~6x f32 temporaries plus
    # double-buffered DMA stay far below v7x's 64 MiB physical VMEM.
    target_bytes = 2 * 1024 * 1024
    tile = min(n, max(8, target_bytes // max(1, c * in_itemsize)))
    tile = max(8, (tile // 8) * 8)   # sublane-aligned
    return min(tile, 1024)


def _vmem_limit_bytes(tile_n, c, in_itemsize):
    tile_in = tile_n * c * in_itemsize
    tile_f32 = tile_n * c * 4
    est = 2 * tile_in + 6 * tile_f32 + 8 * tile_n * 4 + 2 * 128 * 4
    return int(min(max(2 * est, 4 * 1024 * 1024), 48 * 1024 * 1024))


@jax.jit
def core_loss(inputs, target, prior, step):
    """inputs: (N, C) f32/bf16, target: (N,) int, prior: (C,) f32, step: int scalar."""
    n, c = inputs.shape
    in_itemsize = jnp.dtype(inputs.dtype).itemsize
    tile_n = _choose_tile_n(n, c, in_itemsize)
    n_pad = ((n + tile_n - 1) // tile_n) * tile_n
    num_tiles = n_pad // tile_n

    x = inputs
    tgt = target.astype(jnp.int32)
    if n_pad != n:
        x = jnp.pad(x, ((0, n_pad - n), (0, 0)))
        tgt = jnp.pad(tgt, (0, n_pad - n))
    tgt_col = tgt.reshape(n_pad, 1)
    prior_row = prior.astype(jnp.float32).reshape(1, c)
    scalars = jnp.stack([jnp.asarray(step, dtype=jnp.int32),
                         jnp.asarray(n, dtype=jnp.int32)])

    grid_spec = pltpu.PrefetchScalarGridSpec(
        num_scalar_prefetch=1,
        grid=(num_tiles,),
        in_specs=[
            pl.BlockSpec((tile_n, c), lambda i, s: (i, 0)),   # logits tile
            pl.BlockSpec((tile_n, 1), lambda i, s: (i, 0)),   # target column
            pl.BlockSpec((1, c), lambda i, s: (0, 0)),        # prior (resident)
        ],
        out_specs=(
            pl.BlockSpec((tile_n, 1), lambda i, s: (i, 0)),   # per-sample score
            pl.BlockSpec((1, 128), lambda i, s: (i, 0)),      # per-tile partials
        ),
    )

    score_out, partials = pl.pallas_call(
        _core_loss_kernel,
        out_shape=(
            jax.ShapeDtypeStruct((n_pad, 1), jnp.float32),
            jax.ShapeDtypeStruct((num_tiles, 128), jnp.float32),
        ),
        grid_spec=grid_spec,
        compiler_params=pltpu.CompilerParams(
            dimension_semantics=("parallel",),
            vmem_limit_bytes=_vmem_limit_bytes(tile_n, c, in_itemsize),
        ),
    )(scalars, x, tgt_col, prior_row)

    # Scalar epilogue (matches the PyTorch `if sum(v) == 0` / else branches).
    sum_v = jnp.sum(partials[:, 0])
    vsum = jnp.sum(partials[:, 1])
    loss = jnp.where(sum_v == 0.0,
                     (vsum / jnp.float32(n)) / jnp.float32(1e8),
                     vsum / sum_v)
    return loss, score_out[:n, 0]


def core_loss_ref(inputs, target, prior, step):
    """Pure-JAX reference mirroring the PyTorch forward."""
    x = inputs.astype(jnp.float32)
    lse = jax.scipy.special.logsumexp(x, axis=1, keepdims=True)
    log_sm = x - lse
    ce = -jnp.take_along_axis(log_sm, target[:, None].astype(jnp.int32), axis=1)[:, 0]
    loss_full = -jnp.log(jnp.exp(log_sm) + 1e-8)
    score = ce - jnp.mean(loss_full, axis=1)
    loss_cr = BETA * jnp.sum(prior[None, :].astype(jnp.float32) * loss_full, axis=1)
    adj = ce - loss_cr
    v = (score < 0.0).astype(jnp.float32)
    v = jnp.where(step <= 500, jnp.ones_like(v), v)
    sum_v = jnp.sum(v)
    total = jnp.where(sum_v == 0.0,
                      jnp.mean(v * adj) / 1e8,
                      jnp.sum(v * adj) / sum_v)
    return total, score


if __name__ == "__main__":
    key = jax.random.PRNGKey(0)

    # (N=8: single tile, no padding)  (N=13: two tiles + row padding/masking)
    for N, C in ((8, 16), (13, 16)):
        k1, k2 = jax.random.split(jax.random.fold_in(key, N))
        inputs = jax.random.normal(k1, (N, C), dtype=jnp.float32) * 2.0
        target = jax.random.randint(k2, (N,), 0, C, dtype=jnp.int32)
        prior = jnp.arange(1, C + 1, dtype=jnp.float32)
        prior = prior / jnp.sum(prior)

        for step in (100, 1000):  # forced-v path and score<0 path
            loss_val, score_val = core_loss(inputs, target, prior, step)
            jax.block_until_ready((loss_val, score_val))
            loss_exp, score_exp = core_loss_ref(inputs, target, prior, step)
            assert jnp.allclose(loss_val, loss_exp, atol=1e-4, rtol=1e-4), (loss_val, loss_exp)
            assert jnp.allclose(score_val, score_exp, atol=1e-4, rtol=1e-4)

        # native-dtype path: bf16 logits go through the DMA and are upcast in-kernel
        x_bf16 = inputs.astype(jnp.bfloat16)
        loss_b, score_b = core_loss(x_bf16, target, prior, 1000)
        jax.block_until_ready((loss_b, score_b))
        loss_rb, score_rb = core_loss_ref(x_bf16.astype(jnp.float32), target, prior, 1000)
        assert jnp.allclose(loss_b, loss_rb, atol=1e-3, rtol=1e-3), (loss_b, loss_rb)
        assert jnp.allclose(score_b, score_rb, atol=1e-3, rtol=1e-3)

    print("KERNEL_OK")
</pallas_src>

<mosaic_0001>
module attributes {stable_mosaic.version = 11 : i64} {
  func.func @_core_loss_kernel(%arg0: i32, %arg1: memref<2xi32, #tpu.memory_space<smem>>, %arg2: memref<8x16xf32, #tpu.memory_space<vmem>>, %arg3: memref<8x1xi32, #tpu.memory_space<vmem>>, %arg4: memref<1x16xf32, #tpu.memory_space<vmem>>, %arg5: memref<8x1xf32, #tpu.memory_space<vmem>>, %arg6: memref<1x128xf32, #tpu.memory_space<vmem>>) attributes {dimension_semantics = [#tpu.dimension_semantics<parallel>], iteration_bounds = array<i64: 1>, scalar_prefetch = 1 : i64, scratch_operands = 0 : i64, tpu.core_type = #tpu.core_type<tc>, window_params = [{transform_indices = @transform_0, window_bounds = array<i64: 8, 16>}, {transform_indices = @transform_1, window_bounds = array<i64: 8, 1>}, {pipeline_mode = #tpu.pipeline_mode<synchronous>, transform_indices = @transform_2, window_bounds = array<i64: 1, 16>}, {transform_indices = @transform_3, window_bounds = array<i64: 8, 1>}, {transform_indices = @transform_4, window_bounds = array<i64: 1, 128>}]} {
    %c0 = arith.constant 0 : index
    %0 = memref.load %arg1[%c0] : memref<2xi32, #tpu.memory_space<smem>>
    %c1 = arith.constant 1 : index
    %1 = memref.load %arg1[%c1] : memref<2xi32, #tpu.memory_space<smem>>
    %c0_0 = arith.constant 0 : index
    %c0_1 = arith.constant 0 : index
    %2 = vector.load %arg2[%c0_0, %c0_1] : memref<8x16xf32, #tpu.memory_space<vmem>>, vector<8x16xf32>
    %c0_2 = arith.constant 0 : index
    %c0_3 = arith.constant 0 : index
    %3 = vector.load %arg3[%c0_2, %c0_3] : memref<8x1xi32, #tpu.memory_space<vmem>>, vector<8x1xi32>
    %c0_4 = arith.constant 0 : index
    %c0_5 = arith.constant 0 : index
    %4 = vector.load %arg4[%c0_4, %c0_5] : memref<1x16xf32, #tpu.memory_space<vmem>>, vector<1x16xf32>
    %5 = tpu.iota {dimensions = array<i32: 1>} : vector<8x16xi32>
    %6 = vector.broadcast %3 : vector<8x1xi32> to vector<8x16xi32>
    %7 = arith.cmpi eq, %5, %6 : vector<8x16xi32>
    %cst = arith.constant dense<0xFF800000> : vector<8xf32>
    %8 = vector.multi_reduction <maximumf>, %2, %cst [1] : vector<8x16xf32> to vector<8xf32>
    %9 = vector.shape_cast %8 : vector<8xf32> to vector<8x1xf32>
    %10 = vector.broadcast %9 : vector<8x1xf32> to vector<8x16xf32>
    %11 = arith.subf %2, %10 : vector<8x16xf32>
    %12 = math.exp %11 : vector<8x16xf32>
    %cst_6 = arith.constant dense<0.000000e+00> : vector<8xf32>
    %13 = vector.multi_reduction <add>, %12, %cst_6 [1] : vector<8x16xf32> to vector<8xf32>
    %14 = vector.shape_cast %13 : vector<8xf32> to vector<8x1xf32>
    %15 = math.log %14 : vector<8x1xf32>
    %16 = arith.addf %9, %15 : vector<8x1xf32>
    %cst_7 = arith.constant 0.000000e+00 : f32
    %17 = vector.broadcast %cst_7 : f32 to vector<8x16xf32>
    %18 = arith.select %7, %2, %17 : vector<8x16xi1>, vector<8x16xf32>
    %cst_8 = arith.constant dense<0.000000e+00> : vector<8xf32>
    %19 = vector.multi_reduction <add>, %18, %cst_8 [1] : vector<8x16xf32> to vector<8xf32>
    %20 = vector.shape_cast %19 : vector<8xf32> to vector<8x1xf32>
    %21 = arith.subf %16, %20 : vector<8x1xf32>
    %cst_9 = arith.constant 9.99999993E-9 : f32
    %22 = vector.broadcast %cst_9 : f32 to vector<8x1xf32>
    %23 = arith.mulf %22, %14 : vector<8x1xf32>
    %24 = vector.broadcast %23 : vector<8x1xf32> to vector<8x16xf32>
    %25 = arith.addf %12, %24 : vector<8x16xf32>
    %26 = math.log %25 : vector<8x16xf32>
    %27 = vector.broadcast %15 : vector<8x1xf32> to vector<8x16xf32>
    %28 = arith.subf %27, %26 : vector<8x16xf32>
    %cst_10 = arith.constant dense<0.000000e+00> : vector<8xf32>
    %29 = vector.multi_reduction <add>, %28, %cst_10 [1] : vector<8x16xf32> to vector<8xf32>
    %30 = vector.shape_cast %29 : vector<8xf32> to vector<8x1xf32>
    %cst_11 = arith.constant 6.250000e-02 : f32
    %31 = vector.broadcast %cst_11 : f32 to vector<8x1xf32>
    %32 = arith.mulf %30, %31 : vector<8x1xf32>
    %33 = arith.subf %21, %32 : vector<8x1xf32>
    %34 = vector.broadcast %4 : vector<1x16xf32> to vector<8x16xf32>
    %35 = arith.mulf %34, %28 : vector<8x16xf32>
    %cst_12 = arith.constant dense<0.000000e+00> : vector<8xf32>
    %36 = vector.multi_reduction <add>, %35, %cst_12 [1] : vector<8x16xf32> to vector<8xf32>
    %37 = vector.shape_cast %36 : vector<8xf32> to vector<8x1xf32>
    %cst_13 = arith.constant 1.200000e+00 : f32
    %38 = vector.broadcast %cst_13 : f32 to vector<8x1xf32>
    %39 = arith.mulf %38, %37 : vector<8x1xf32>
    %40 = arith.subf %21, %39 : vector<8x1xf32>
    %c8_i32 = arith.constant 8 : i32
    %41 = arith.muli %arg0, %c8_i32 : i32
    %42 = tpu.iota {dimensions = array<i32: 0>} : vector<8x1xi32>
    %43 = vector.broadcast %41 : i32 to vector<8x1xi32>
    %44 = arith.addi %43, %42 : vector<8x1xi32>
    %45 = vector.broadcast %1 : i32 to vector<8x1xi32>
    %46 = arith.cmpi slt, %44, %45 : vector<8x1xi32>
    %c500_i32 = arith.constant 500 : i32
    %47 = arith.cmpi sle, %0, %c500_i32 : i32
    %cst_14 = arith.constant 0.000000e+00 : f32
    %48 = vector.broadcast %cst_14 : f32 to vector<8x1xf32>
    %49 = arith.cmpf olt, %33, %48 : vector<8x1xf32>
    %50 = vector.broadcast %47 : i1 to vector<8x1xi1>
    %51 = arith.ori %50, %49 : vector<8x1xi1>
    %52 = arith.andi %51, %46 : vector<8x1xi1>
    %53 = arith.extui %52 : vector<8x1xi1> to vector<8x1xi32>
    %54 = arith.sitofp %53 : vector<8x1xi32> to vector<8x1xf32>
    %55 = vector.shape_cast %54 : vector<8x1xf32> to vector<1x8x1xf32>
    %cst_15 = arith.constant dense<0.000000e+00> : vector<1xf32>
    %56 = vector.multi_reduction <add>, %55, %cst_15 [1, 2] : vector<1x8x1xf32> to vector<1xf32>
    %57 = vector.shape_cast %56 : vector<1xf32> to vector<1x1x1xf32>
    %58 = vector.extract %57[0, 0, 0] : f32 from vector<1x1x1xf32>
    %59 = arith.mulf %54, %40 : vector<8x1xf32>
    %60 = vector.shape_cast %59 : vector<8x1xf32> to vector<1x8x1xf32>
    %cst_16 = arith.constant dense<0.000000e+00> : vector<1xf32>
    %61 = vector.multi_reduction <add>, %60, %cst_16 [1, 2] : vector<1x8x1xf32> to vector<1xf32>
    %62 = vector.shape_cast %61 : vector<1xf32> to vector<1x1x1xf32>
    %63 = vector.extract %62[0, 0, 0] : f32 from vector<1x1x1xf32>
    %c0_17 = arith.constant 0 : index
    %c0_18 = arith.constant 0 : index
    %64 = vector.load %arg5[%c0_17, %c0_18] : memref<8x1xf32, #tpu.memory_space<vmem>>, vector<8x1xf32>
    tpu.vector_store %arg5[%c0_17, %c0_18], %33 {strides = array<i32>} : memref<8x1xf32, #tpu.memory_space<vmem>>, vector<8x1xf32>,
    %65 = tpu.iota {dimensions = array<i32: 1>} : vector<1x128xi32>
    %c0_i32 = arith.constant 0 : i32
    %66 = vector.broadcast %c0_i32 : i32 to vector<1x128xi32>
    %67 = arith.cmpi eq, %65, %66 : vector<1x128xi32>
    %c1_i32 = arith.constant 1 : i32
    %68 = vector.broadcast %c1_i32 : i32 to vector<1x128xi32>
    %69 = arith.cmpi eq, %65, %68 : vector<1x128xi32>
    %cst_19 = arith.constant 0.000000e+00 : f32
    %70 = vector.broadcast %63 : f32 to vector<1x128xf32>
    %71 = vector.broadcast %cst_19 : f32 to vector<1x128xf32>
    %72 = arith.select %69, %70, %71 : vector<1x128xi1>, vector<1x128xf32>
    %73 = vector.broadcast %58 : f32 to vector<1x128xf32>
    %74 = arith.select %67, %73, %72 : vector<1x128xi1>, vector<1x128xf32>
    %c0_20 = arith.constant 0 : index
    %c0_21 = arith.constant 0 : index
    %75 = vector.load %arg6[%c0_20, %c0_21] : memref<1x128xf32, #tpu.memory_space<vmem>>, vector<1x128xf32>
    tpu.vector_store %arg6[%c0_20, %c0_21], %74 {strides = array<i32>} : memref<1x128xf32, #tpu.memory_space<vmem>>, vector<1x128xf32>,
    return
  }
  func.func @transform_0(%arg0: i32, %arg1: memref<2xi32, #tpu.memory_space<smem>>) -> (i32, i32) {
    %c0_i32 = arith.constant 0 : i32
    %c0_i32_0 = arith.constant 0 : i32
    return %arg0, %c0_i32 : i32, i32
  }
  func.func @transform_1(%arg0: i32, %arg1: memref<2xi32, #tpu.memory_space<smem>>) -> (i32, i32) {
    %c0_i32 = arith.constant 0 : i32
    %c0_i32_0 = arith.constant 0 : i32
    return %arg0, %c0_i32 : i32, i32
  }
  func.func @transform_2(%arg0: i32, %arg1: memref<2xi32, #tpu.memory_space<smem>>) -> (i32, i32) {
    %c0_i32 = arith.constant 0 : i32
    %c0_i32_0 = arith.constant 0 : i32
    %c0_i32_1 = arith.constant 0 : i32
    return %c0_i32, %c0_i32_0 : i32, i32
  }
  func.func @transform_3(%arg0: i32, %arg1: memref<2xi32, #tpu.memory_space<smem>>) -> (i32, i32) {
    %c0_i32 = arith.constant 0 : i32
    %c0_i32_0 = arith.constant 0 : i32
    return %arg0, %c0_i32 : i32, i32
  }
  func.func @transform_4(%arg0: i32, %arg1: memref<2xi32, #tpu.memory_space<smem>>) -> (i32, i32) {
    %c0_i32 = arith.constant 0 : i32
    %c0_i32_0 = arith.constant 0 : i32
    return %arg0, %c0_i32 : i32, i32
  }
}

</mosaic_0001>

<bundles_post_ra>
// kernel: core_loss.1
= control target key start
LH: loop header
LB: loop body
LE: loop exit
PB: predicated region body
PF: predicated region fallthrough
CT: control target
= control target key end

     0   :  { %s159_s21 = smov [#allocation3]   ;;  %s223_s0 = inlined_call_operand.vmem [shape: s32[2], index: 0, kind: input, shape index: {}]   ;;  %s224_s1 = inlined_call_operand.vmem [shape: f32[8,16], index: 1, kind: input, shape index: {}]   ;;  %s225_s2 = inlined_call_operand.vmem [shape: s32[8,1], index: 2, kind: input, shape index: {}]   ;;  %s226_s3 = inlined_call_operand.vmem [shape: f32[1,16], index: 3, kind: input, shape index: {}]   ;;  %s227_s4 = inlined_call_operand.vmem [shape: f32[8,1], index: 4, kind: output, shape index: {0}]   ;;  %s228_s5 = inlined_call_operand.vmem [shape: f32[1,128], index: 5, kind: output, shape index: {1}]  }
   0x1   :  { %s12_s20 = sshll.u32 %s223_s0, 4  ;;  %s13_s20 = int_to_ptr.vmem [resolvable:$true] %s12_s20 }
   0x2   :  { %15 = dma.vmem_to_smem %s13_s20, 16, %s159_s21, [#allocation2] }
   0x3   :  { %157 = dma.done.wait [#allocation2], 16 }
   0x4   :  { %158 = vsyncadd [#allocation2], 4294967280 }
   0x5   :  { %18 = sfence }
   0x6   :  { %v27_v0 = vld [vmem:[%s224_s1] sm:$0xff]  ;;  %vm36_vm0 = vcmask 130048   ;;  %v160_v3 = vmov 0   ;;  %v30_v4 = vlaneseq  ;;  %s127_s26 = sld [smem:[#allocation3 + $0x1]]  ;;  %vm89_vm2 = vcmask 7168  }
   0x7   :  { %v28_v1 = vld [vmem:[%s225_s2] sm:$0xff]  ;;  %v37_v2 = vsel %vm36_vm0, %v27_v0, -inf  ;;  %136 = vset.pattern.permute.xlu1 %v160_v3  ;;  %137 = vset.pattern.permute.xlu0 %v160_v3  ;;  %s25_s2 = sld [smem:[#allocation3]]  ;;  %v161_v36 = vmov 0.0  }
   0x8   :  { %38 = vmax.xlane.f32.xlu0 %v37_v2  ;;  %33 = vperm.xlu1 %136, %v28_v1   ;;  %v202_v5 = vand.u32 127, %v30_v4  ;;  %v138_v23 = vld [vmem:[%s226_s3] ss:$0 sm:$0xff]  ;;  %v75_v29 = vshrl.u32 %v30_v4, 7 }
   0xa   :  { %vm113_vm8 = vcmp.eq.s32.totalorder %v202_v5, 1  ;;  %vm112_vm9 = vcmp.eq.s32.totalorder %v202_v5, 0 }
   0xc   :  { %v78_v33 = vstv %s127_s26 }
   0xd   :  { %p80_p0 = scmp.le.s32.totalorder %s25_s2, 500  ;;  %vm79_vm4 = vcmp.lt.s32.totalorder %v75_v29, %v78_v33 }
   0xf   :  { %s82_s27 = scalar_select %p80_p0, 1, 0 }
  0x11   :  { %v83_v30 = vstv %s82_s27 }
  0x12   :  { %vm84_vm3 = vcmp.eq.s32.totalorder %v83_v30, 1 }
  0x7a   :  { %v34_v6 = vpop.permute.xlu1 %33 }
  0x7b   :  { %v39_v7 = vpop.xlane.xlu0 %38  ;;  %vm35_vm1 = vcmp.eq.s32.totalorder %v202_v5, %v34_v6 }
  0x7c   :  { %v40_v8 = vsub.f32 %v27_v0, %v39_v7  ;;  %v49_v9 = vsel %vm35_vm1, %v27_v0, 0.0 }
  0x7d   :  { %v50_v10 = vsel %vm36_vm0, %v49_v9, 0.0 }
  0x7e   :  { %v41_v11 = vmul.f32 1.442695, %v40_v8  ;;  %51 = vadd.xlane.f32.xlu1 %v50_v10 }
  0x80   :  { %139 = vpow2.f32 %v41_v11 }
  0x86   :  { %v140_v12 = vpop.eup %139 }
  0x87   :  { %v43_v13 = vsel %vm36_vm0, %v140_v12, 0.0 }
  0x88   :  { %44 = vadd.xlane.f32.xlu0 %v43_v13 }
  0xf1   :  { %v52_v27 = vpop.xlane.xlu1 %51 }
  0xfb   :  { %v45_v14 = vpop.xlane.xlu0 %44 }
  0xfc   :  { %v54_v15 = vmul.f32 1e-08, %v45_v14  ;;  %141 = vlog2.f32 %v45_v14 }
  0xfe   :  { %v55_v16 = vadd.f32 %v140_v12, %v54_v15 }
 0x100   :  { %143 = vlog2.f32 %v55_v16 }
 0x102   :  { %v142_v17 = vpop.eup %141 }
 0x103   :  { %v47_v19 = vmul.f32 0.6931472, %v142_v17 }
 0x105   :  { %v48_v26 = vadd.f32 %v47_v19, %v39_v7 }
 0x106   :  { %v144_v18 = vpop.eup %143 }
 0x107   :  { %v57_v20 = vmul.f32 0.6931472, %v144_v18  ;;  %v53_v31 = vsub.f32 %v48_v26, %v52_v27 }
 0x109   :  { %v58_v21 = vsub.f32 %v47_v19, %v57_v20 }
 0x10b   :  { %v59_v22 = vsel %vm36_vm0, %v58_v21, 0.0  ;;  %v67_v24 = vmul.f32 %v138_v23, %v58_v21 }
 0x10c   :  { %60 = vadd.xlane.f32.xlu2 %v59_v22 }
 0x10d   :  { %v68_v25 = vsel %vm36_vm0, %v67_v24, 0.0 }
 0x114   :  { %69 = vadd.xlane.f32.xlu2 %v68_v25 }
 0x17f   :  { %v61_v28 = vpop.xlane.xlu2 %60 }
 0x180   :  { %v62_v32 = vmul.f32 0.0625, %v61_v28 }
 0x182   :  { %v63_v34 = vsub.f32 %v53_v31, %v62_v32 }
 0x184   :  { %vm81_vm5 = vcmp.lt.f32.partialorder %v63_v34, 0.0  ;;  %111 = vst.msk [vmem:[%s227_s4] sm:$0xff] %vm89_vm2, %v63_v34 }
 0x185   :  { %vm85_vm6 = vmor %vm84_vm3, %vm81_vm5 }
 0x186   :  { %vm86_vm7 = vmand %vm85_vm6, %vm79_vm4 }
 0x187   :  { %v70_v35 = vpop.xlane.xlu2 %69  ;;  %v128_v37 = vsel %vm86_vm7, 1.0, %v161_v36 }
 0x188   :  { %v71_v38 = vmul.f32 1.2, %v70_v35  ;;  %v90_v39 = vsel %vm89_vm2, %v128_v37, 0.0 }
 0x189   :  { %91 = vadd.xlane.f32.xlu0 %v90_v39 }
 0x18a   :  { %v72_v40 = vsub.f32 %v53_v31, %v71_v38 }
 0x18c   :  { %v100_v41 = vmul.f32 %v128_v37, %v72_v40 }
 0x18e   :  { %v101_v42 = vsel %vm89_vm2, %v100_v41, 0.0 }
 0x18f   :  { %102 = vadd.xlane.f32.xlu2 %v101_v42 }
 0x1fc   :  { %v92_v43 = vpop.xlane.xlu0 %91 }
 0x1fd   :  { %v93_v44 = vrot.slane %v92_v43, 4 }
 0x1ff   :  { %v94_v45 = vadd.f32 %v93_v44, %v92_v43 }
 0x201   :  { %v95_v46 = vrot.slane %v94_v45, 2 }
 0x202   :  { %v103_v47 = vpop.xlane.xlu2 %102 }
 0x203   :  { %v104_v48 = vrot.slane %v103_v47, 4  ;;  %v96_v49 = vadd.f32 %v95_v46, %v94_v45 }
 0x205   :  { %v105_v50 = vadd.f32 %v104_v48, %v103_v47  ;;  %v97_v51 = vrot.slane %v96_v49, 1 }
 0x207   :  { %v106_v52 = vrot.slane %v105_v50, 2  ;;  %v98_v53 = vadd.f32 %v97_v51, %v96_v49 }
 0x209   :  { %v107_v54 = vadd.f32 %v106_v52, %v105_v50  ;;  %129 = vpush %v98_v53 }
 0x20b   :  { %v108_v55 = vrot.slane %v107_v54, 1 }
 0x20d   :  { %v109_v56 = vadd.f32 %v108_v55, %v107_v54 }
 0x20f   :  { %131 = vpush %v109_v56 }
 0x23a   :  { %s130_s4 = spop %129 }
 0x23b   :  { %v116_v58 = vstv %s130_s4 }
 0x240   :  { %s132_s29 = spop %131 }
 0x241   :  { %v114_v57 = vstv %s132_s29 }
 0x242   :  { %v115_v59 = vsel %vm113_vm8, %v114_v57, 0.0 }
 0x243   :  { %v117_v60 = vsel %vm112_vm9, %v116_v58, %v115_v59 }
 0x244   :  { %118 = vst [vmem:[%s228_s5] sm:$0x1] %v117_v60 }

</bundles_post_ra>
